<compile_context>
chip_gen: v7x
topology: tpu7x:2x2x1
jax: 0.10.0
libtpu: 0.0.40
codegen_flags: <defaults>
</compile_context>

<pallas_src>
import jax
import jax.numpy as jnp
from jax.experimental import pallas as pl
from jax.experimental.pallas import tpu as pltpu


def _build_kernel(merge, has_mask, compute_dtype, approx_recip):
    compute_dtype = jnp.dtype(compute_dtype)
    acc_dtype = jnp.bfloat16 if compute_dtype == jnp.bfloat16 else jnp.float32

    def kernel(*refs):
        it = iter(refs)
        x_ref = next(it)
        mb_ref = next(it) if has_mask else None
        w1_ref, b1_ref, w2_ref, b2_ref = next(it), next(it), next(it), next(it)
        if merge:
            wm_ref, bm_ref = next(it), next(it)
        out_ref = next(it)

        tb, s, h = x_ref.shape
        g = w2_ref.shape[1]

        # x is already pre-cast to compute_dtype in the wrapper (no dead f32 copy).
        x_mm = x_ref[...]                                           # (TB, S, H)
        x2d = x_mm.reshape(tb * s, h)                               # S is sublane-aligned

        # --- MLP: Linear -> ReLU -> Linear on the folded (TB*S, H) M-dim ---
        hid = jnp.dot(x2d, w1_ref[...], preferred_element_type=acc_dtype)
        hid = jnp.maximum(hid + b1_ref[...].astype(acc_dtype), 0.0)  # bf16 VPU on v6e/v7x
        att = jnp.dot(hid, w2_ref[...], preferred_element_type=jnp.float32)
        att = (att + b2_ref[...]).reshape(tb, s, g)                  # (TB, S, G), f32

        # --- additive mask bias (wrapper precomputes mask * -1e9, shape (TB, S, 1)) ---
        if has_mask:
            att = att + mb_ref[...]

        # --- softmax over the sequence dim (torch dim=1), f32 throughout ---
        m = jnp.max(att, axis=1, keepdims=True)                      # (TB, 1, G)
        e = jnp.exp(att - m)
        denom = jnp.sum(e, axis=1, keepdims=True)                    # (TB, 1, G)
        if approx_recip:
            p = e * pl.reciprocal(denom, approx=True)                # EUP slot
        else:
            p = e / denom

        # --- pooled[b, g, :] = sum_s p[b, s, g] * x[b, s, :] (contract over S) ---
        pooled = jnp.einsum("bsg,bsh->bgh", p.astype(compute_dtype), x_mm,
                            preferred_element_type=jnp.float32)      # (TB, G, H) f32

        if merge:
            # cat_g(pooled) @ Wm  ==  sum_g pooled[:, g, :] @ Wm3[g]
            # (wm reshaped to (G, H, 2H) in the wrapper -> no (TB, G*H) relayout here)
            acc = jnp.dot(pooled[:, 0, :].astype(compute_dtype), wm_ref[0],
                          preferred_element_type=jnp.float32)
            for gi in range(1, g):
                acc = acc + jnp.dot(pooled[:, gi, :].astype(compute_dtype), wm_ref[gi],
                                    preferred_element_type=jnp.float32)
            out_ref[...] = (acc + bm_ref[...]).astype(out_ref.dtype)  # (TB, 2H), dense store
        else:
            out_ref[...] = pooled.astype(out_ref.dtype)               # (TB, G, H), no reshape

    return kernel


def _vmem_budget_bytes():
    """Generation-aware VMEM budget: ~75% of physical (48 MiB on v7x, 96 MiB on v5e/v6e)."""
    cap = 64 * 1024 * 1024  # conservative fallback (v7x per-TC VMEM)
    try:
        info = pltpu.get_tpu_info()
        cap = int(getattr(info, "vmem_capacity_bytes", cap))
    except Exception:
        pass
    return int(min((cap * 3) // 4, 100 * 1024 * 1024))


def _per_batch_step_bytes(s, h, mid, g, merge, has_mask, x_itemsize, hid_itemsize):
    xb = s * h * x_itemsize * 2                    # x tile, double-buffered
    mb = (s * 4 * 2) if has_mask else 0            # additive mask-bias tile
    hid = s * mid * hid_itemsize                   # MLP hidden activation
    att = s * g * 4 * 3                            # logits / exp / probs (f32)
    pooled = g * h * 4                             # pooled glimpses (f32)
    outb = (2 * h if merge else g * h) * 4 * 2     # output tile, double-buffered
    return xb + mb + hid + att + pooled + outb


def _fixed_step_bytes(h, mid, g, merge, w_itemsize):
    w = (h * mid + mid * g) * w_itemsize + (mid + g) * 4
    if merge:
        w += g * h * (2 * h) * w_itemsize + (2 * h) * 4
    return 2 * w                                   # weight blocks are double-buffered


def _pick_block_batch(b, per_batch_bytes, fixed_bytes, budget, cap=64, require_sublane=False):
    """Largest divisor of B that fits the VMEM budget; prefers >= 2 grid steps (megacore).
    require_sublane: the 2D merge output block needs TB % 8 == 0 or TB == B."""
    cands = [t for t in range(1, min(b, cap) + 1) if b % t == 0]
    if require_sublane:
        cands = [t for t in cands if (t % 8 == 0) or (t == b)]
        if not cands:
            return b  # full-batch block is always layout-legal
    best = cands[0]
    for t in cands:
        if fixed_bytes + t * per_batch_bytes <= budget:
            best = max(best, t)
    if best == b and b > 1:
        smaller = [t for t in cands if t < b]
        if smaller:
            best = smaller[-1]
    return best


def attention_flattening(x, x_mask, params, merge=False, matmul_dtype=None,
                         approx_softmax_recip=True):
    """x: [B, S, H]; x_mask: [B, 1, 1, S] bool (True == masked) or None.

    Returns [B, G, H] (merge=False) or [B, 2*H] (merge=True).
    """
    B, S, H = x.shape
    mid = params["w1"].shape[1]
    G = params["w2"].shape[1]
    out_dtype = x.dtype
    compute_dtype = jnp.dtype(matmul_dtype) if matmul_dtype is not None else jnp.dtype(x.dtype)

    # Sublane-align S so the in-kernel (TB,S,H)->(TB*S,H) fold is layout-free.
    sub = 16 if compute_dtype == jnp.bfloat16 else 8
    S_pad = ((S + sub - 1) // sub) * sub
    has_mask = (x_mask is not None) or (S_pad != S)

    # Pre-cast activations/weights to the MXU dtype OUTSIDE the kernel (halves DMA for bf16).
    x_in = x.astype(compute_dtype)
    if S_pad != S:
        x_in = jnp.pad(x_in, ((0, 0), (0, S_pad - S), (0, 0)))
    w1 = params["w1"].astype(compute_dtype)
    w2 = params["w2"].astype(compute_dtype)
    b1 = params["b1"].astype(jnp.float32)
    b2 = params["b2"].astype(jnp.float32)

    if has_mask:
        # Additive f32 bias: -1e9 on masked (and padded) positions, 0 elsewhere.
        bias = jnp.zeros((B, S_pad, 1), jnp.float32)
        if x_mask is not None:
            bias = bias.at[:, :S, :].set(
                jnp.where(x_mask.reshape(B, S, 1), jnp.float32(-1e9), jnp.float32(0.0)))
        if S_pad != S:
            bias = bias.at[:, S:, :].set(jnp.float32(-1e9))

    budget = _vmem_budget_bytes()
    x_itemsize = jnp.dtype(compute_dtype).itemsize
    hid_itemsize = 2 if compute_dtype == jnp.bfloat16 else 4
    per_b = _per_batch_step_bytes(S_pad, H, mid, G, merge, has_mask, x_itemsize, hid_itemsize)
    fixed = _fixed_step_bytes(H, mid, G, merge, x_itemsize)
    TB = _pick_block_batch(B, per_b, fixed, budget, cap=64, require_sublane=merge)
    grid = (B // TB,)

    in_specs = [pl.BlockSpec((TB, S_pad, H), lambda i: (i, 0, 0))]          # x (streamed)
    args = [x_in]
    if has_mask:
        in_specs.append(pl.BlockSpec((TB, S_pad, 1), lambda i: (i, 0, 0)))  # mask bias
        args.append(bias)
    # Weights/biases: constant block index -> fetched once, resident.
    in_specs += [
        pl.BlockSpec((H, mid), lambda i: (0, 0)),                           # w1
        pl.BlockSpec((1, mid), lambda i: (0, 0)),                           # b1
        pl.BlockSpec((mid, G), lambda i: (0, 0)),                           # w2
        pl.BlockSpec((1, G), lambda i: (0, 0)),                             # b2
    ]
    args += [w1, b1, w2, b2]

    if merge:
        wm3 = params["wm"].reshape(G, H, 2 * H).astype(compute_dtype)       # (G, H, 2H)
        bm = params["bm"].astype(jnp.float32)
        in_specs += [
            pl.BlockSpec((G, H, 2 * H), lambda i: (0, 0, 0)),               # wm (fused merge)
            pl.BlockSpec((1, 2 * H), lambda i: (0, 0)),                     # bm
        ]
        args += [wm3, bm]
        out_shape = jax.ShapeDtypeStruct((B, 2 * H), out_dtype)
        out_spec = pl.BlockSpec((TB, 2 * H), lambda i: (i, 0))              # dense 2D store
    else:
        out_shape = jax.ShapeDtypeStruct((B, G, H), out_dtype)
        out_spec = pl.BlockSpec((TB, G, H), lambda i: (i, 0, 0))            # store pooled directly

    return pl.pallas_call(
        _build_kernel(merge, has_mask, compute_dtype, approx_softmax_recip),
        out_shape=out_shape,
        grid_spec=pltpu.PrefetchScalarGridSpec(
            num_scalar_prefetch=0,
            grid=grid,
            in_specs=in_specs,
            out_specs=out_spec,
        ),
        compiler_params=pltpu.CompilerParams(
            dimension_semantics=("parallel",),
            vmem_limit_bytes=budget,
        ),
    )(*args)


def _reference(x, x_mask, params, merge):
    """Pure-JAX reference mirroring the PyTorch forward (masked_fill semantics)."""
    h = jnp.maximum(x @ params["w1"] + params["b1"], 0.0)
    att = h @ params["w2"] + params["b2"]                      # (B, S, G)
    if x_mask is not None:
        m = x_mask.reshape(x.shape[0], x.shape[1], 1)
        att = jnp.where(m, -1e9, att)
    att = jax.nn.softmax(att, axis=1)
    out = jnp.einsum("bsg,bsh->bgh", att, x)                   # (B, G, H)
    if merge:
        return out.reshape(x.shape[0], -1) @ params["wm"] + params["bm"]
    return out


def _init_params(key, hidden, mid, glimpse):
    ks = jax.random.split(key, 6)
    scale = 0.02
    return {
        # weights stored as (in, out), i.e. already-transposed torch Linear weights
        "w1": jax.random.normal(ks[0], (hidden, mid), jnp.float32) * scale,
        "b1": jax.random.normal(ks[1], (1, mid), jnp.float32) * scale,
        "w2": jax.random.normal(ks[2], (mid, glimpse), jnp.float32) * scale,
        "b2": jax.random.normal(ks[3], (1, glimpse), jnp.float32) * scale,
        "wm": jax.random.normal(ks[4], (hidden * glimpse, hidden * 2), jnp.float32) * scale,
        "bm": jax.random.normal(ks[5], (1, hidden * 2), jnp.float32) * scale,
    }


if __name__ == "__main__":
    B, S, H = 2, 8, 32
    MID, G = 16, 4

    key = jax.random.PRNGKey(0)
    kx, kp = jax.random.split(key, 2)

    x = jax.random.normal(kx, (B, S, H), jnp.float32)
    # x_mask: [B, 1, 1, S] bool, True == masked-out position
    x_mask = jnp.zeros((B, 1, 1, S), jnp.bool_).at[1, 0, 0, -2:].set(True)
    params = _init_params(kp, H, MID, G)

    # Tolerance 5e-3 because the kernel normalizes the softmax with the EUP
    # approximate reciprocal (pl.reciprocal(..., approx=True)); opt out via
    # approx_softmax_recip=False for exact division.
    TOL = dict(atol=5e-3, rtol=5e-3)

    # non-merge path: [B, G, H]
    out_stack = jax.block_until_ready(attention_flattening(x, x_mask, params, merge=False))
    ref_stack = _reference(x, x_mask, params, merge=False)
    assert out_stack.shape == (B, G, H)
    assert jnp.allclose(out_stack, ref_stack, **TOL)

    # non-merge path with x_mask=None (mask input is skipped entirely)
    out_nomask = jax.block_until_ready(attention_flattening(x, None, params, merge=False))
    ref_nomask = _reference(x, None, params, merge=False)
    assert jnp.allclose(out_nomask, ref_nomask, **TOL)

    # merge path (fused Linear_merge, no (TB, G*H) relayout): [B, 2*H]
    out_merge = jax.block_until_ready(attention_flattening(x, x_mask, params, merge=True))
    ref_merge = _reference(x, x_mask, params, merge=True)
    assert out_merge.shape == (B, 2 * H)
    assert jnp.allclose(out_merge, ref_merge, **TOL)

    # bf16 MXU-input path (x/weights pre-cast in the wrapper, bf16 hidden activation);
    # mask / softmax / bias math stays f32.
    out_bf16 = jax.block_until_ready(
        attention_flattening(x, x_mask, params, merge=True, matmul_dtype=jnp.bfloat16))
    assert jnp.allclose(out_bf16, ref_merge, atol=5e-2, rtol=5e-2)

    print("KERNEL_OK")
</pallas_src>

<mosaic_0001>
module attributes {stable_mosaic.version = 11 : i64} {
  func.func @kernel(%arg0: i32, %arg1: memref<1x8x32xf32, #tpu.memory_space<vmem>>, %arg2: memref<1x8x1xf32, #tpu.memory_space<vmem>>, %arg3: memref<32x16xf32, #tpu.memory_space<vmem>>, %arg4: memref<1x16xf32, #tpu.memory_space<vmem>>, %arg5: memref<16x4xf32, #tpu.memory_space<vmem>>, %arg6: memref<1x4xf32, #tpu.memory_space<vmem>>, %arg7: memref<1x4x32xf32, #tpu.memory_space<vmem>>) attributes {dimension_semantics = [#tpu.dimension_semantics<parallel>], iteration_bounds = array<i64: 2>, scalar_prefetch = 0 : i64, scratch_operands = 0 : i64, tpu.core_type = #tpu.core_type<tc>, window_params = [{transform_indices = @transform_0, window_bounds = array<i64: 1, 8, 32>}, {transform_indices = @transform_1, window_bounds = array<i64: 1, 8, 1>}, {pipeline_mode = #tpu.pipeline_mode<synchronous>, transform_indices = @transform_2, window_bounds = array<i64: 32, 16>}, {pipeline_mode = #tpu.pipeline_mode<synchronous>, transform_indices = @transform_3, window_bounds = array<i64: 1, 16>}, {pipeline_mode = #tpu.pipeline_mode<synchronous>, transform_indices = @transform_4, window_bounds = array<i64: 16, 4>}, {pipeline_mode = #tpu.pipeline_mode<synchronous>, transform_indices = @transform_5, window_bounds = array<i64: 1, 4>}, {transform_indices = @transform_6, window_bounds = array<i64: 1, 4, 32>}]} {
    %c0 = arith.constant 0 : index
    %c0_0 = arith.constant 0 : index
    %c0_1 = arith.constant 0 : index
    %0 = vector.load %arg1[%c0, %c0_0, %c0_1] : memref<1x8x32xf32, #tpu.memory_space<vmem>>, vector<1x8x32xf32>
    %1 = vector.shape_cast %0 : vector<1x8x32xf32> to vector<8x32xf32>
    %c0_2 = arith.constant 0 : index
    %c0_3 = arith.constant 0 : index
    %2 = vector.load %arg3[%c0_2, %c0_3] : memref<32x16xf32, #tpu.memory_space<vmem>>, vector<32x16xf32>
    %cst = arith.constant dense<0.000000e+00> : vector<8x16xf32>
    %3 = tpu.matmul %1, %2, %cst {dimension_numbers = #tpu.dot_dimension_numbers<[1], [0], [0], [1], [0, 0, 1, 1], [], []>} : vector<8x32xf32>, vector<32x16xf32>, vector<8x16xf32> -> vector<8x16xf32>
    %c0_4 = arith.constant 0 : index
    %c0_5 = arith.constant 0 : index
    %4 = vector.load %arg4[%c0_4, %c0_5] : memref<1x16xf32, #tpu.memory_space<vmem>>, vector<1x16xf32>
    %5 = vector.broadcast %4 : vector<1x16xf32> to vector<8x16xf32>
    %6 = arith.addf %3, %5 : vector<8x16xf32>
    %cst_6 = arith.constant 0.000000e+00 : f32
    %7 = vector.broadcast %cst_6 : f32 to vector<8x16xf32>
    %8 = arith.maximumf %6, %7 : vector<8x16xf32>
    %c0_7 = arith.constant 0 : index
    %c0_8 = arith.constant 0 : index
    %9 = vector.load %arg5[%c0_7, %c0_8] : memref<16x4xf32, #tpu.memory_space<vmem>>, vector<16x4xf32>
    %cst_9 = arith.constant dense<0.000000e+00> : vector<8x4xf32>
    %10 = tpu.matmul %8, %9, %cst_9 {dimension_numbers = #tpu.dot_dimension_numbers<[1], [0], [0], [1], [0, 0, 1, 1], [], []>} : vector<8x16xf32>, vector<16x4xf32>, vector<8x4xf32> -> vector<8x4xf32>
    %c0_10 = arith.constant 0 : index
    %c0_11 = arith.constant 0 : index
    %11 = vector.load %arg6[%c0_10, %c0_11] : memref<1x4xf32, #tpu.memory_space<vmem>>, vector<1x4xf32>
    %12 = vector.broadcast %11 : vector<1x4xf32> to vector<8x4xf32>
    %13 = arith.addf %10, %12 : vector<8x4xf32>
    %14 = vector.shape_cast %13 : vector<8x4xf32> to vector<1x8x4xf32>
    %c0_12 = arith.constant 0 : index
    %c0_13 = arith.constant 0 : index
    %c0_14 = arith.constant 0 : index
    %15 = vector.load %arg2[%c0_12, %c0_13, %c0_14] : memref<1x8x1xf32, #tpu.memory_space<vmem>>, vector<1x8x1xf32>
    %16 = vector.broadcast %15 : vector<1x8x1xf32> to vector<1x8x4xf32>
    %17 = arith.addf %14, %16 : vector<1x8x4xf32>
    %cst_15 = arith.constant dense<0xFF800000> : vector<1x4xf32>
    %18 = vector.multi_reduction <maximumf>, %17, %cst_15 [1] : vector<1x8x4xf32> to vector<1x4xf32>
    %19 = vector.shape_cast %18 : vector<1x4xf32> to vector<1x1x4xf32>
    %20 = vector.broadcast %19 : vector<1x1x4xf32> to vector<1x8x4xf32>
    %21 = arith.subf %17, %20 : vector<1x8x4xf32>
    %22 = math.exp %21 : vector<1x8x4xf32>
    %cst_16 = arith.constant dense<0.000000e+00> : vector<1x4xf32>
    %23 = vector.multi_reduction <add>, %22, %cst_16 [1] : vector<1x8x4xf32> to vector<1x4xf32>
    %24 = vector.shape_cast %23 : vector<1x4xf32> to vector<1x1x4xf32>
    %25 = tpu.reciprocal %24 {approx = true} : vector<1x1x4xf32> -> vector<1x1x4xf32>
    %26 = vector.broadcast %25 : vector<1x1x4xf32> to vector<1x8x4xf32>
    %27 = arith.mulf %22, %26 : vector<1x8x4xf32>
    "tpu.trace_start"() <{level = 10 : i32, message = "bsg,bsh->bgh"}> : () -> ()
    %cst_17 = arith.constant dense<0.000000e+00> : vector<1x4x32xf32>
    %28 = tpu.matmul %27, %0, %cst_17 {dimension_numbers = #tpu.dot_dimension_numbers<[1], [1], [2], [2], [0, 0, 0, 2, 1, 2], [0], [0]>} : vector<1x8x4xf32>, vector<1x8x32xf32>, vector<1x4x32xf32> -> vector<1x4x32xf32>
    "tpu.trace_stop"() : () -> ()
    %c0_18 = arith.constant 0 : index
    %c0_19 = arith.constant 0 : index
    %c0_20 = arith.constant 0 : index
    %29 = vector.load %arg7[%c0_18, %c0_19, %c0_20] : memref<1x4x32xf32, #tpu.memory_space<vmem>>, vector<1x4x32xf32>
    tpu.vector_store %arg7[%c0_18, %c0_19, %c0_20], %28 {strides = array<i32>} : memref<1x4x32xf32, #tpu.memory_space<vmem>>, vector<1x4x32xf32>,
    return
  }
  func.func @transform_0(%arg0: i32) -> (i32, i32, i32) {
    %c0_i32 = arith.constant 0 : i32
    %c0_i32_0 = arith.constant 0 : i32
    %c0_i32_1 = arith.constant 0 : i32
    return %arg0, %c0_i32, %c0_i32_0 : i32, i32, i32
  }
  func.func @transform_1(%arg0: i32) -> (i32, i32, i32) {
    %c0_i32 = arith.constant 0 : i32
    %c0_i32_0 = arith.constant 0 : i32
    %c0_i32_1 = arith.constant 0 : i32
    return %arg0, %c0_i32, %c0_i32_0 : i32, i32, i32
  }
  func.func @transform_2(%arg0: i32) -> (i32, i32) {
    %c0_i32 = arith.constant 0 : i32
    %c0_i32_0 = arith.constant 0 : i32
    %c0_i32_1 = arith.constant 0 : i32
    return %c0_i32, %c0_i32_0 : i32, i32
  }
  func.func @transform_3(%arg0: i32) -> (i32, i32) {
    %c0_i32 = arith.constant 0 : i32
    %c0_i32_0 = arith.constant 0 : i32
    %c0_i32_1 = arith.constant 0 : i32
    return %c0_i32, %c0_i32_0 : i32, i32
  }
  func.func @transform_4(%arg0: i32) -> (i32, i32) {
    %c0_i32 = arith.constant 0 : i32
    %c0_i32_0 = arith.constant 0 : i32
    %c0_i32_1 = arith.constant 0 : i32
    return %c0_i32, %c0_i32_0 : i32, i32
  }
  func.func @transform_5(%arg0: i32) -> (i32, i32) {
    %c0_i32 = arith.constant 0 : i32
    %c0_i32_0 = arith.constant 0 : i32
    %c0_i32_1 = arith.constant 0 : i32
    return %c0_i32, %c0_i32_0 : i32, i32
  }
  func.func @transform_6(%arg0: i32) -> (i32, i32, i32) {
    %c0_i32 = arith.constant 0 : i32
    %c0_i32_0 = arith.constant 0 : i32
    %c0_i32_1 = arith.constant 0 : i32
    return %arg0, %c0_i32, %c0_i32_0 : i32, i32, i32
  }
}

</mosaic_0001>

<bundles_post_ra>
// kernel: tpu_custom_call.1
= control target key start
LH: loop header
LB: loop body
LE: loop exit
PB: predicated region body
PF: predicated region fallthrough
CT: control target
= control target key end

     0   :  { %11 = vsyncpa [#allocation3], 0  ;;  %s994_s0 = inlined_call_operand.vmem [shape: f32[2,8,32], index: 0, kind: input, shape index: {}]   ;;  %s995_s1 = inlined_call_operand.vmem [shape: f32[2,8,1], index: 1, kind: input, shape index: {}]   ;;  %s996_s2 = inlined_call_operand.vmem [shape: f32[32,16], index: 2, kind: input, shape index: {}]   ;;  %s997_s3 = inlined_call_operand.vmem [shape: f32[1,16], index: 3, kind: input, shape index: {}]   ;;  %s998_s4 = inlined_call_operand.vmem [shape: f32[16,4], index: 4, kind: input, shape index: {}]   ;;  %s999_s5 = inlined_call_operand.vmem [shape: f32[1,4], index: 5, kind: input, shape index: {}]   ;;  %s1000_s6 = inlined_call_operand.hbm [shape: f32[2,4,32], index: 6, kind: output, shape index: {}]  }
   0x1   :  { %13 = vsyncpa [#allocation3 + $0x1], 0  ;;  %s864_s21 = smov 0   ;;  %s866_s22 = smov 0  }
   0x2   :  { %s868_s23 = smov 0   ;;  %s870_s24 = smov 0  }
   0x3 LB: > { %s885_s25 = sadd.s32 4294967295, %s822_s24   ;;  %s654_s26 = sadd.s32 4294967294, %s822_s24   ;;  %s822_s24 = sphi %s870_s24, %s1006_s24   ;;  %s818_s23 = sphi %s868_s23, %s1005_s23   ;;  %s814_s22 = sphi %s866_s22, %s1004_s22   ;;  %s810_s21 = sphi %s864_s21, %s1003_s21  }
   0x4   : > { %s889_s27 = sadd.s32 1, %s822_s24   ;;  %s162_s28 = sadd.s32 1, %s818_s23 }
   0x5   : > { %s159_s29 = ssub.s32 %s822_s24, %s889_s27  ;;  %p172_p0 = scmp.ne.s32.totalorder %s818_s23, %s814_s22 }
   0x6   : > { %p160_p1 = scmp.eq.s32.totalorder %s159_s29, 0  ;;  %p173_p2 = scmp.eq.s32.totalorder %s885_s25, 1 }
   0x7   : > { %p178_p3 = scmp.ne.s32.totalorder %s814_s22, %s810_s21  ;;  %p179_p4 = scmp.eq.s32.totalorder %s654_s26, 1 }
   0x8   : > { %s900_s30 = scalar_select %p160_p1, %s818_s23, %s162_s28  }
   0x9   : > { %p902_p5 = por %p173_p2, %p172_p0  ;;  %p906_p6 = por %p179_p4, %p178_p3 }
   0xa   : > { %p657_p7 = scmp.ge.s32.totalorder %s822_s24, 1  ;;  %p223_p8 = scmp.lt.s32.totalorder %s822_s24, 3 }
   0xc   : > { %p224_p9 = pnand %p657_p7, %p223_p8 }
   0xd   : > { %v265_v0 = vld [vmem:[%s996_s2] sm:$0xff] (!%p224_p9)  ;;  %v266_v1 = vld [vmem:[%s996_s2 + $0x8] sm:$0xff] (!%p224_p9)  ;;  %v267_v2 = vld [vmem:[%s996_s2 + $0x10] sm:$0xff] (!%p224_p9)  ;;  %v824_v3 = vmov (!%p224_p9), 0.0|0.0   ;;  %vm825_vm0 = vmmov (!%p224_p9), 0   ;;  %v826_v6 = vmov (!%p224_p9), 0.0  }
   0xe   : > { %227 = sbr.rel (%p224_p9) target bundleno = 867 (0x363), region = 44  ;;  %703 = vmatprep.subr.bf16.mxu0 (!%p224_p9), %v824_v3  ;;  %v704_v4 = vpack.c.bf16 (!%p224_p9), %v266_v1, %v265_v0  ;;  %v268_v5 = vld [vmem:[%s996_s2 + $0x18] sm:$0xff] (!%p224_p9)  ;;  %688 = vmatprep.mubr.msk.f32.mxu0 (!%p224_p9), %vm825_vm0, %v826_v6  ;;  %p256_p10 = scmp.lt.s32.totalorder (!%p224_p9), %s885_s25, 1  ;;  %vm276_vm1 = vcmask (!%p224_p9), 261120   ;;  %v351_v9 = vld [vmem:[%s998_s4] sm:$0xff] (!%p224_p9)  ;;  %v352_v10 = vld [vmem:[%s998_s4 + $0x8] sm:$0xff] (!%p224_p9) }
   0xf   : > { %709 = vmatprep.subr.bf16.mxu1 (!%p224_p9), %v824_v3  ;;  %695 = vmatprep.mubr.msk.f32.mxu1 (!%p224_p9), %vm825_vm0, %v826_v6  ;;  %v707_v7 = vpack.c.bf16 (!%p224_p9), %v268_v5, %v267_v2  ;;  %v710_v11 = vpack.c.bf16 (!%p224_p9), %v352_v10, %v351_v9  ;;  %v827_v12 = vmov (!%p224_p9), 0   ;;  %v661_v14 = vld [vmem:[%s997_s3] ss:$0 sm:$0xff] (!%p224_p9)  ;;  %vm360_vm2 = vcmask (!%p224_p9), 130048   ;;  %s667_s20 = sshll.u32 (!%p224_p9), %s885_s25, 6 }
  0x10   : > { %705 = vmatpush3.bf16.msra.mxu0 (!%p224_p9), %v704_v4  ;;  %755 = vset.pattern.permute.xlu0 (!%p224_p9), %v827_v12  ;;  %v663_v19 = vld [vmem:[%s999_s5] ss:$0 sm:$0xff] (!%p224_p9)  ;;  %vm441_vm3 = vcmask (!%p224_p9), 31744   ;;  %vm493_vm4 = vcmask (!%p224_p9), 64512   ;;  %vm567_vm5 = vcmask (!%p224_p9), 257024   ;;  %s952_s10 = scalar_lea.hbm (!%p224_p9), %s1000_s6, %s667_s20 }
  0x11   : > { %706 = vmatprep.subr.bf16.mxu0 (!%p224_p9), %v824_v3  ;;  %711 = vmatpush3.bf16.msra.mxu1 (!%p224_p9), %v710_v11 }
  0x12   : > { %698 = vmatprep.subr.mxu1 (!%p224_p9), %v826_v6 }
  0x14   : > { %708 = vmatpush3.bf16.msra.mxu0 (!%p224_p9), %v707_v7 }
  0x15   : > { %s257_s17 = scalar_select %p256_p10, %s885_s25, 1 }
  0x16   : > { %s828_s25 = smov [#allocation2]  }
  0x17   : > { %s659_s18 = sshll.u32 %s257_s17, 3 }
  0x18   : > { %s259_s26 = scalar_lea.vmem %s994_s0, %s659_s18  ;;  %s263_s13 = scalar_lea.vmem %s995_s1, %s659_s18 }
  0x19   : > { %v264_v8 = vld [vmem:[%s259_s26] sm:$0xff]  ;;  %s253_s18 = sand.u32 1, %s814_s22  }
  0x1a   : > { %689 = vmatmul.mubr.msk.f32.vlgmr.msra.gmra.mrb[0].mxu0 %vm276_vm1, %v264_v8  ;;  %v434_v13 = vld [vmem:[%s263_s13] sm:$0xff]  ;;  %s658_s19 = sshll.u32 %s253_s18, 2  ;;  %s570_s11 = scalar_lea.sflag [#allocation3], %s253_s18 }
  0x1b   : > { %437 = vperm.xlu0 %755, %v434_v13   ;;  %s255_s26 = scalar_lea.vmem [#allocation2], %s658_s19  ;;  %s764_s13 = sshll.u32 %s828_s25, 4  ;;  %s765_s13 = int_to_ptr.vmem [resolvable:$false] %s764_s13 }
  0x1c   : > { %s583_s28 = sshll.u32 %s255_s26, 4  ;;  %s766_s14 = scalar_lea.vmem %s765_s13, 128  ;;  %s954_s28 = int_to_ptr.vmem [resolvable:$true] %s583_s28 }
  0x1d   : > { %s760_s12 = scalar_lea.vmem %s954_s28, 64  ;;  %p767_p0 = scmp.lt.s32.totalorder %s954_s28, %s765_s13 }
  0x1e   : > { %p761_p11 = scmp.ne.s32.totalorder %s954_s28, %s760_s12  ;;  %p768_p1 = scmp.lt.s32.totalorder %s766_s14, %s760_s12 }
  0x20   : > { %p762_p12 = pnand %p761_p11, %p902_p5  ;;  %p769_p2 = por %p768_p1, %p767_p0 }
  0x22   : > { %p763_p13 = pneg %p762_p12 }
  0x24   : > { %p770_p3 = pnand %p769_p2, %p763_p13 }
  0x9a   : > { %v438_v21 = vpop.permute.xlu0 %437 }
  0xed   : > { %v346_v15 = vpop.f32.mrb[0].mxu0 }
  0xee   : > { %v347_v16 = vadd.f32 %v661_v14, %v346_v15  ;;  %v690_v17 = vpop.f32.mrb[1].mxu0 }
  0xf0   : > { %v350_v18 = vmax.f32 %v347_v16, 0.0 }
  0xf2   : > { %696 = vmatmul.mubr.msk.f32.vlgmr.msra.gmra.mrb[0].mxu1 %vm360_vm2, %v350_v18 }
  0xf3   : > { %699 = vmatpush3.msra.mxu1 %v264_v8  ;;  %700 = vmatprep.mubr.msk.f32.mxu1 %vm825_vm0, %v826_v6 }
 0x1c5   : > { %v430_v20 = vpop.f32.mrb[0].mxu1 }
 0x1c6   : > { %v431_v22 = vadd.f32 %v663_v19, %v430_v20  ;;  %v697_v23 = vpop.f32.mrb[1].mxu1 }
 0x1c8   : > { %v440_v24 = vadd.f32 %v438_v21, %v431_v22 }
 0x1ca   : > { %v442_v25 = vsel %vm441_vm3, %v440_v24, -inf }
 0x1cb   : > { %v443_v26 = vrot.slane %v442_v25, 4 }
 0x1cd   : > { %v444_v27 = vmax.f32 %v442_v25, %v443_v26 }
 0x1cf   : > { %v445_v28 = vrot.slane %v444_v27, 2 }
 0x1d1   : > { %v446_v29 = vmax.f32 %v444_v27, %v445_v28 }
 0x1d3   : > { %v447_v30 = vrot.slane %v446_v29, 1 }
 0x1d5   : > { %v448_v31 = vmax.f32 %v446_v29, %v447_v30 }
 0x1d7   : > { %v449_v32 = vsub.f32 %v440_v24, %v448_v31 }
 0x1d9   : > { %v450_v33 = vmul.f32 1.442695, %v449_v32 }
 0x1db   : > { %756 = vpow2.f32 %v450_v33 }
 0x1e5   : > { %v757_v34 = vpop.eup %756 }
 0x1e6   : > { %v452_v35 = vsel %vm441_vm3, %v757_v34, 0.0 }
 0x1e7   : > { %v453_v36 = vrot.slane %v452_v35, 4 }
 0x1e9   : > { %v454_v37 = vadd.f32 %v453_v36, %v452_v35 }
 0x1eb   : > { %v455_v38 = vrot.slane %v454_v37, 2 }
 0x1ed   : > { %v456_v39 = vadd.f32 %v455_v38, %v454_v37 }
 0x1ef   : > { %v457_v40 = vrot.slane %v456_v39, 1 }
 0x1f1   : > { %v458_v41 = vadd.f32 %v457_v40, %v456_v39 }
 0x1f3   : > { %758 = vrcp.f32 %v458_v41 }
 0x1fd   : > { %v759_v42 = vpop.eup %758 }
 0x1fe   : > { %v460_v43 = vmul.f32 %v759_v42, %v757_v34 }
 0x200   : > { %461 = vxpose.xlu0.b32.start.end [1/1] (short) (narrow) %v460_v43, 8 }
 0x280   : > { %v477_v44 = vpop.trf.xlu0 }
 0x281   : > { %701 = vmatmul.mubr.msk.f32.vlgmr.msra.gmra.mrb[2].mxu1 %vm493_vm4, %v477_v44 }
 0x354   : > { %v563_v45 = vpop.f32.mrb[2].mxu1 }
 0x355   : > { %568 = vst.msk [vmem:[%s255_s26] sm:$0xf] %vm567_vm5, %v563_v45  ;;  %v702_v46 = vpop.f32.mrb[3].mxu1 }
 0x356   : > { %773 = shalt.err (!%p770_p3)
}
 0x357   : > { %s774_s15 = scalar_lea.hbm %s952_s10, 64  ;;  %s778_s18 = scalar_lea.hbm %s1000_s6, 128 }
 0x358   : > { %p775_p4 = scmp.ne.s32.totalorder %s952_s10, %s774_s15  ;;  %p779_p9 = scmp.lt.u32.totalorder %s952_s10, %s1000_s6 }
 0x359   : > { %p780_p10 = scmp.lt.u32.totalorder %s778_s18, %s774_s15  ;;  %p782_p12 = scmp.lt.u32.totalorder %s774_s15, %s952_s10 }
 0x35a   : > { %p776_p7 = pnand %p775_p4, %p902_p5 }
 0x35b   : > { %p781_p11 = por %p780_p10, %p779_p9 }
 0x35c   : > { %p777_p8 = pneg %p776_p7 }
 0x35d   : > { %p783_p13 = por %p782_p12, %p781_p11 }
 0x35f   : > { %p784_p0 = pnand %p783_p13, %p777_p8 }
 0x361   : > { %787 = shalt.err (!%p784_p0)
}
 0x362   : > { %712 = dma.vmem_to_hbm [thread:$0]  (%p902_p5), %s954_s28, 64, %s952_s10, %s570_s11  }
 0x363 PF: > { %p718_p1 = scmp.ge.s32.totalorder %s822_s24, 2  ;;  %s595_s26 = sand.u32 1, %s810_s21  }
 0x364   : > { %s596_s29 = scalar_lea.sflag [#allocation3], %s595_s26 }
 0x365   : > { %p715_p2 = pnand %p718_p1, %p906_p6 }
 0x367   : > { %805 = dma.done.wait (!%p715_p2), %s596_s29, 64  }
 0x368   : > { %807 = vsyncadd (!%p715_p2), %s596_s29, 4294967232  ;;  %p16_p3 = scmp.ge.s32.totalorder %s889_s27, 4   ;;  %s1003_s21 = smov %s814_s22 }
 0x369   : > { %s1004_s22 = smov %s818_s23  ;;  %s1005_s23 = smov %s900_s30 }
 0x36a   : > { %s1006_s24 = smov %s889_s27  ;;  %18 = sbr.rel (!%p16_p3) target bundleno = 3 (0x3), region = 82 }
 0x371   :  { %601 = vsyncpa [#allocation3], 1 }
 0x372   :  { %603 = vsyncpa [#allocation3 + $0x1], 1 }

</bundles_post_ra>
